<compile_context>
chip_gen: v7x
topology: tpu7x:2x2x1
jax: 0.10.0
libtpu: 0.0.40
codegen_flags: <defaults>
</compile_context>

<pallas_src>
import functools
import math

import jax
import jax.numpy as jnp
from jax.experimental import pallas as pl
from jax.experimental.pallas import tpu as pltpu


def _reactive_mlp_kernel(xt_ref, w1_ref, b1_ref, w2_ref, b2_ref, w3_ref,
                         b3_ref, ot_ref):
    """Fused transposed 3-layer MLP (batch in lanes).

    xt_ref : [in_dim, blk]  (f32 or bf16; cast to weight dtype in-kernel)
    wN_ref : [outN, inN]    (PyTorch nn.Linear weight layout, compute dtype)
    bN_ref : [outN, 1]      (f32, broadcast over the lane/batch dim)
    ot_ref : [act_dim, blk]

    out^T = W3 @ tanh(W2 @ tanh(W1 @ x^T + b1) + b2) + b3
    """
    w_dtype = w1_ref.dtype
    xt = xt_ref[...].astype(w_dtype)
    h1 = jnp.tanh(
        jnp.dot(w1_ref[...], xt, preferred_element_type=jnp.float32)
        + b1_ref[...])
    h2 = jnp.tanh(
        jnp.dot(w2_ref[...], h1.astype(w_dtype),
                preferred_element_type=jnp.float32)
        + b2_ref[...])
    out = (jnp.dot(w3_ref[...], h2.astype(w_dtype),
                   preferred_element_type=jnp.float32)
           + b3_ref[...])
    ot_ref[...] = out.astype(ot_ref.dtype)


def _round_up(n, m):
    return ((n + m - 1) // m) * m


def _pick_batch_tile(B, block_b):
    """Lane tile over batch: multiple of 128, and >= 2 grid steps if possible."""
    if B <= 128:
        return B  # full-extent block (legal even when not a 128-multiple)
    # Cap so the grid has at least 2 steps -> both TensorCores used on v7x.
    half = _round_up(pl.cdiv(B, 2), 128)
    return max(128, min(block_b, half))


def _forward_t(x_t, w1, b1, w2, b2, w3, b3, *, block_b, compute_dtype,
               out_dtype):
    in_dim, B = x_t.shape
    hid_dim = w1.shape[0]
    act_dim = w3.shape[0]

    blk = _pick_batch_tile(B, block_b)
    grid = (pl.cdiv(B, blk),)

    # Weights to MXU dtype (tiny, one-time); biases stay f32.
    w1c = w1.astype(compute_dtype)
    w2c = w2.astype(compute_dtype)
    w3c = w3.astype(compute_dtype)
    b1f = b1.astype(jnp.float32)
    b2f = b2.astype(jnp.float32)
    b3f = b3.astype(jnp.float32)

    # Weights/biases are tiny (<10 KB total): constant index_map keeps them
    # VMEM-resident across all grid steps (no re-DMA).
    # TODO(synk): mark these pipeline_mode=pl.Buffered(1) once single-buffer
    #             pipeline_mode is confirmed supported on the target jax
    #             version (saves a negligible second constant buffer).
    const = lambda shape: pl.BlockSpec(shape, lambda i: (0, 0))

    return pl.pallas_call(
        _reactive_mlp_kernel,
        out_shape=jax.ShapeDtypeStruct((act_dim, B), out_dtype),
        grid_spec=pltpu.PrefetchScalarGridSpec(
            num_scalar_prefetch=0,
            grid=grid,
            in_specs=[
                pl.BlockSpec((in_dim, blk), lambda i: (0, i)),   # x^T tile
                const((hid_dim, in_dim)),                        # W1
                const((hid_dim, 1)),                             # b1
                const((hid_dim, hid_dim)),                       # W2
                const((hid_dim, 1)),                             # b2
                const((act_dim, hid_dim)),                       # W3
                const((act_dim, 1)),                             # b3
            ],
            out_specs=pl.BlockSpec((act_dim, blk), lambda i: (0, i)),
        ),
        compiler_params=pltpu.CompilerParams(
            dimension_semantics=("parallel",)),
    )(x_t, w1c, b1f, w2c, b2f, w3c, b3f)


@functools.partial(jax.jit,
                   static_argnames=("block_b", "compute_dtype", "out_dtype"))
def reactive_model_forward_t(x_t, w1, b1, w2, b2, w3, b3, *, block_b=4096,
                             compute_dtype=jnp.bfloat16,
                             out_dtype=jnp.float32):
    """Preferred lane-dense entry point: x_t [in_dim, B] -> out_t [act_dim, B]."""
    return _forward_t(x_t, w1, b1, w2, b2, w3, b3, block_b=block_b,
                      compute_dtype=compute_dtype, out_dtype=out_dtype)


@functools.partial(jax.jit,
                   static_argnames=("block_b", "compute_dtype", "out_dtype"))
def reactive_model_forward(x, w1, b1, w2, b2, w3, b3, *, block_b=4096,
                           compute_dtype=jnp.bfloat16,
                           out_dtype=jnp.float32):
    """Module-semantics entry point: x [B, in_dim] f32 -> [B, act_dim].

    The transposes here are layout plumbing outside the kernel (the input
    transpose is fused with the bf16 cast by XLA, so x is read once in f32
    and written once in bf16).  Callers that can keep batch in the last dim
    should call reactive_model_forward_t directly and skip them entirely.
    """
    x_t = jnp.transpose(x).astype(compute_dtype)
    out_t = _forward_t(x_t, w1, b1, w2, b2, w3, b3, block_b=block_b,
                       compute_dtype=compute_dtype, out_dtype=out_dtype)
    return jnp.transpose(out_t)


def init_params(key, in_dim, hid_dim, act_dim):
    """Deterministic Kaiming-normal (fan_in) weights, zero biases.

    Weights kept in PyTorch nn.Linear layout [out, in]; biases as [out, 1]
    columns (broadcast over the lane/batch dim inside the kernel).
    gain(relu) = sqrt(2), gain(linear) = 1; std = gain / sqrt(fan_in)."""
    k1, k2, k3 = jax.random.split(key, 3)
    std1 = math.sqrt(2.0) / math.sqrt(in_dim)
    std2 = math.sqrt(2.0) / math.sqrt(hid_dim)
    std3 = 1.0 / math.sqrt(hid_dim)
    w1 = std1 * jax.random.normal(k1, (hid_dim, in_dim), jnp.float32)
    w2 = std2 * jax.random.normal(k2, (hid_dim, hid_dim), jnp.float32)
    w3 = std3 * jax.random.normal(k3, (act_dim, hid_dim), jnp.float32)
    b1 = jnp.zeros((hid_dim, 1), jnp.float32)
    b2 = jnp.zeros((hid_dim, 1), jnp.float32)
    b3 = jnp.zeros((act_dim, 1), jnp.float32)
    return w1, b1, w2, b2, w3, b3


def _reference_forward(x, params, compute_dtype):
    """Pure-JAX reference mirroring the kernel's dtype handling."""
    w1, b1, w2, b2, w3, b3 = params

    def q(a):  # quantize to compute_dtype, back to f32 (mirrors MXU inputs)
        return a.astype(compute_dtype).astype(jnp.float32)

    xq = q(x)
    h1 = q(jnp.tanh(xq @ q(w1).T + b1[:, 0]))
    h2 = q(jnp.tanh(h1 @ q(w2).T + b2[:, 0]))
    return h2 @ q(w3).T + b3[:, 0]


if __name__ == "__main__":
    # config: in_dim=16, hid_dim=32, act_dim=8, activation_fun='T.tanh',
    #         policy_residual_connection=False
    in_dim, hid_dim, act_dim = 16, 32, 8

    key = jax.random.PRNGKey(0)
    kx, kx2, kp = jax.random.split(key, 3)
    params = init_params(kp, in_dim, hid_dim, act_dim)

    # Small batch: single full-extent block (blk == B == 8).
    B = 8
    x = jax.random.normal(kx, (B, in_dim), jnp.float32)
    out = jax.block_until_ready(reactive_model_forward(x, *params))
    ref = _reference_forward(x, params, jnp.bfloat16)
    assert out.shape == (B, act_dim)
    assert jnp.allclose(out, ref, atol=2e-3, rtol=2e-3), \
        float(jnp.max(jnp.abs(out - ref)))

    # Non-128-multiple batch: exercises the 2-step grid (v7x dual-TC path)
    # and the ragged, masked last lane block (no pad/slice round-trips).
    B2 = 200
    x2 = jax.random.normal(kx2, (B2, in_dim), jnp.float32)
    out2 = jax.block_until_ready(reactive_model_forward(x2, *params))
    ref2 = _reference_forward(x2, params, jnp.bfloat16)
    assert out2.shape == (B2, act_dim)
    assert jnp.allclose(out2, ref2, atol=2e-3, rtol=2e-3), \
        float(jnp.max(jnp.abs(out2 - ref2)))

    # Lane-dense entry point (no wrapper transposes; x passed f32, cast in-kernel).
    out_t = jax.block_until_ready(
        reactive_model_forward_t(jnp.transpose(x2), *params))
    assert out_t.shape == (act_dim, B2)
    assert jnp.allclose(jnp.transpose(out_t), ref2, atol=2e-3, rtol=2e-3)

    print("KERNEL_OK")
</pallas_src>

<mosaic_0001>
module attributes {stable_mosaic.version = 11 : i64} {
  func.func @_reactive_mlp_kernel(%arg0: i32, %arg1: memref<16x8xbf16, #tpu.memory_space<vmem>>, %arg2: memref<32x16xbf16, #tpu.memory_space<vmem>>, %arg3: memref<32x1xf32, #tpu.memory_space<vmem>>, %arg4: memref<32x32xbf16, #tpu.memory_space<vmem>>, %arg5: memref<32x1xf32, #tpu.memory_space<vmem>>, %arg6: memref<8x32xbf16, #tpu.memory_space<vmem>>, %arg7: memref<8x1xf32, #tpu.memory_space<vmem>>, %arg8: memref<8x8xf32, #tpu.memory_space<vmem>>) attributes {dimension_semantics = [#tpu.dimension_semantics<parallel>], iteration_bounds = array<i64: 1>, scalar_prefetch = 0 : i64, scratch_operands = 0 : i64, tpu.core_type = #tpu.core_type<tc>, window_params = [{transform_indices = @transform_0, window_bounds = array<i64: 16, 8>}, {pipeline_mode = #tpu.pipeline_mode<synchronous>, transform_indices = @transform_1, window_bounds = array<i64: 32, 16>}, {pipeline_mode = #tpu.pipeline_mode<synchronous>, transform_indices = @transform_2, window_bounds = array<i64: 32, 1>}, {pipeline_mode = #tpu.pipeline_mode<synchronous>, transform_indices = @transform_3, window_bounds = array<i64: 32, 32>}, {pipeline_mode = #tpu.pipeline_mode<synchronous>, transform_indices = @transform_4, window_bounds = array<i64: 32, 1>}, {pipeline_mode = #tpu.pipeline_mode<synchronous>, transform_indices = @transform_5, window_bounds = array<i64: 8, 32>}, {pipeline_mode = #tpu.pipeline_mode<synchronous>, transform_indices = @transform_6, window_bounds = array<i64: 8, 1>}, {transform_indices = @transform_7, window_bounds = array<i64: 8, 8>}]} {
    %c0 = arith.constant 0 : index
    %c0_0 = arith.constant 0 : index
    %0 = vector.load %arg1[%c0, %c0_0] : memref<16x8xbf16, #tpu.memory_space<vmem>>, vector<16x8xbf16>
    %c0_1 = arith.constant 0 : index
    %c0_2 = arith.constant 0 : index
    %1 = vector.load %arg2[%c0_1, %c0_2] : memref<32x16xbf16, #tpu.memory_space<vmem>>, vector<32x16xbf16>
    %cst = arith.constant dense<0.000000e+00> : vector<32x8xf32>
    %2 = tpu.matmul %1, %0, %cst {dimension_numbers = #tpu.dot_dimension_numbers<[1], [0], [0], [1], [0, 0, 1, 1], [], []>} : vector<32x16xbf16>, vector<16x8xbf16>, vector<32x8xf32> -> vector<32x8xf32>
    %c0_3 = arith.constant 0 : index
    %c0_4 = arith.constant 0 : index
    %3 = vector.load %arg3[%c0_3, %c0_4] : memref<32x1xf32, #tpu.memory_space<vmem>>, vector<32x1xf32>
    %4 = vector.broadcast %3 : vector<32x1xf32> to vector<32x8xf32>
    %5 = arith.addf %2, %4 : vector<32x8xf32>
    %6 = math.tanh %5 : vector<32x8xf32>
    %c0_5 = arith.constant 0 : index
    %c0_6 = arith.constant 0 : index
    %7 = vector.load %arg4[%c0_5, %c0_6] : memref<32x32xbf16, #tpu.memory_space<vmem>>, vector<32x32xbf16>
    %8 = arith.truncf %6 : vector<32x8xf32> to vector<32x8xbf16>
    %cst_7 = arith.constant dense<0.000000e+00> : vector<32x8xf32>
    %9 = tpu.matmul %7, %8, %cst_7 {dimension_numbers = #tpu.dot_dimension_numbers<[1], [0], [0], [1], [0, 0, 1, 1], [], []>} : vector<32x32xbf16>, vector<32x8xbf16>, vector<32x8xf32> -> vector<32x8xf32>
    %c0_8 = arith.constant 0 : index
    %c0_9 = arith.constant 0 : index
    %10 = vector.load %arg5[%c0_8, %c0_9] : memref<32x1xf32, #tpu.memory_space<vmem>>, vector<32x1xf32>
    %11 = vector.broadcast %10 : vector<32x1xf32> to vector<32x8xf32>
    %12 = arith.addf %9, %11 : vector<32x8xf32>
    %13 = math.tanh %12 : vector<32x8xf32>
    %c0_10 = arith.constant 0 : index
    %c0_11 = arith.constant 0 : index
    %14 = vector.load %arg6[%c0_10, %c0_11] : memref<8x32xbf16, #tpu.memory_space<vmem>>, vector<8x32xbf16>
    %15 = arith.truncf %13 : vector<32x8xf32> to vector<32x8xbf16>
    %cst_12 = arith.constant dense<0.000000e+00> : vector<8x8xf32>
    %16 = tpu.matmul %14, %15, %cst_12 {dimension_numbers = #tpu.dot_dimension_numbers<[1], [0], [0], [1], [0, 0, 1, 1], [], []>} : vector<8x32xbf16>, vector<32x8xbf16>, vector<8x8xf32> -> vector<8x8xf32>
    %c0_13 = arith.constant 0 : index
    %c0_14 = arith.constant 0 : index
    %17 = vector.load %arg7[%c0_13, %c0_14] : memref<8x1xf32, #tpu.memory_space<vmem>>, vector<8x1xf32>
    %18 = vector.broadcast %17 : vector<8x1xf32> to vector<8x8xf32>
    %19 = arith.addf %16, %18 : vector<8x8xf32>
    %c0_15 = arith.constant 0 : index
    %c0_16 = arith.constant 0 : index
    %20 = vector.load %arg8[%c0_15, %c0_16] : memref<8x8xf32, #tpu.memory_space<vmem>>, vector<8x8xf32>
    tpu.vector_store %arg8[%c0_15, %c0_16], %19 {strides = array<i32>} : memref<8x8xf32, #tpu.memory_space<vmem>>, vector<8x8xf32>,
    return
  }
  func.func @transform_0(%arg0: i32) -> (i32, i32) {
    %c0_i32 = arith.constant 0 : i32
    %c0_i32_0 = arith.constant 0 : i32
    return %c0_i32, %arg0 : i32, i32
  }
  func.func @transform_1(%arg0: i32) -> (i32, i32) {
    %c0_i32 = arith.constant 0 : i32
    %c0_i32_0 = arith.constant 0 : i32
    %c0_i32_1 = arith.constant 0 : i32
    return %c0_i32, %c0_i32_0 : i32, i32
  }
  func.func @transform_2(%arg0: i32) -> (i32, i32) {
    %c0_i32 = arith.constant 0 : i32
    %c0_i32_0 = arith.constant 0 : i32
    %c0_i32_1 = arith.constant 0 : i32
    return %c0_i32, %c0_i32_0 : i32, i32
  }
  func.func @transform_3(%arg0: i32) -> (i32, i32) {
    %c0_i32 = arith.constant 0 : i32
    %c0_i32_0 = arith.constant 0 : i32
    %c0_i32_1 = arith.constant 0 : i32
    return %c0_i32, %c0_i32_0 : i32, i32
  }
  func.func @transform_4(%arg0: i32) -> (i32, i32) {
    %c0_i32 = arith.constant 0 : i32
    %c0_i32_0 = arith.constant 0 : i32
    %c0_i32_1 = arith.constant 0 : i32
    return %c0_i32, %c0_i32_0 : i32, i32
  }
  func.func @transform_5(%arg0: i32) -> (i32, i32) {
    %c0_i32 = arith.constant 0 : i32
    %c0_i32_0 = arith.constant 0 : i32
    %c0_i32_1 = arith.constant 0 : i32
    return %c0_i32, %c0_i32_0 : i32, i32
  }
  func.func @transform_6(%arg0: i32) -> (i32, i32) {
    %c0_i32 = arith.constant 0 : i32
    %c0_i32_0 = arith.constant 0 : i32
    %c0_i32_1 = arith.constant 0 : i32
    return %c0_i32, %c0_i32_0 : i32, i32
  }
  func.func @transform_7(%arg0: i32) -> (i32, i32) {
    %c0_i32 = arith.constant 0 : i32
    %c0_i32_0 = arith.constant 0 : i32
    return %c0_i32, %arg0 : i32, i32
  }
}

</mosaic_0001>

<bundles_post_ra>
// kernel: reactive_model_forward.1
= control target key start
LH: loop header
LB: loop body
LE: loop exit
PB: predicated region body
PF: predicated region fallthrough
CT: control target
= control target key end

     0   :  { %vm73_vm0 = vcmask 130048   ;;  %v359_v1 = vmov 0   ;;  %vm173_vm1 = vcmask 261120   ;;  %v360_v33 = vmov 0.0   ;;  %s455_s0 = inlined_call_operand.vmem [shape: bf16[16,8], index: 0, kind: input, shape index: {}]   ;;  %s456_s1 = inlined_call_operand.vmem [shape: bf16[32,16], index: 1, kind: input, shape index: {}]   ;;  %s457_s2 = inlined_call_operand.vmem [shape: f32[32,1], index: 2, kind: input, shape index: {}]   ;;  %s458_s4 = inlined_call_operand.vmem [shape: f32[32,1], index: 4, kind: input, shape index: {}]   ;;  %s459_s6 = inlined_call_operand.vmem [shape: f32[8,1], index: 6, kind: input, shape index: {}]   ;;  %s460_s3 = inlined_call_operand.vmem [shape: bf16[32,32], index: 3, kind: input, shape index: {}]   ;;  %s461_s5 = inlined_call_operand.vmem [shape: bf16[8,32], index: 5, kind: input, shape index: {}]   ;;  %s462_s7 = inlined_call_operand.vmem [shape: f32[8,8], index: 7, kind: output, shape index: {}]  }
   0x1   :  { %v338_v0 = vld [vmem:[%s455_s0] sm:$0xff]   ;;  %336 = vset.pattern.permute.xlu0 %v359_v1  ;;  %337 = vset.pattern.permute.xlu1 %v359_v1  ;;  %v340_v3 = vld [vmem:[%s456_s1 + $0x8] sm:$0xff]   ;;  %v35_v5 = vld [vmem:[%s457_s2 + $0x10] sm:$0xff]  ;;  %vm361_vm2 = vmmov 0   ;;  %vm285_vm3 = vcmask 64512  }
   0x2   :  { %v339_v2 = vld [vmem:[%s456_s1] sm:$0xff]   ;;  %311 = vmatprep.subr.bf16.mxu0 %v338_v0  ;;  %49 = vperm.xlu1 %337, %v35_v5   ;;  %v34_v6 = vld [vmem:[%s457_s2 + $0x8] sm:$0xff]  ;;  %v36_v7 = vld [vmem:[%s457_s2 + $0x18] sm:$0xff] }
   0x3   :  { %312 = vmatpush3.bf16.msra.mxu0 %v338_v0  ;;  %313 = vmatprep.mubr.msk.bf16.mxu0 %vm73_vm0, %v339_v2  ;;  %v33_v4 = vld [vmem:[%s457_s2] sm:$0xff]  ;;  %v140_v9 = vld [vmem:[%s458_s4 + $0x8] sm:$0xff]  ;;  %v141_v10 = vld [vmem:[%s458_s4 + $0x10] sm:$0xff] }
   0x4   :  { %39 = vperm.xlu0 %336, %v33_v4   ;;  %v139_v8 = vld [vmem:[%s458_s4] sm:$0xff]  ;;  %v142_v11 = vld [vmem:[%s458_s4 + $0x18] sm:$0xff]  ;;  %v342_v32 = vld [vmem:[%s460_s3 + $0x8] sm:$0xff]   ;;  %325 = vmatprep.subr.bf16.mxu0 %v360_v33 }
   0x5   :  { %v236_v12 = vld [vmem:[%s459_s6] sm:$0xff] }
   0x6   :  { %314 = vmatmul.mubr.msk.bf16.vlgmr.msra.gmra.mrb[0].mxu0 %vm73_vm0, %v340_v3  ;;  %54 = vperm.xlu1 %337, %v36_v7   ;;  %v341_v13 = vld [vmem:[%s460_s3] sm:$0xff]  }
   0x7   :  { %321 = vmatprep.mubr.msk.bf16.mxu1 %vm173_vm1, %v341_v13  ;;  %329 = vmatprep.mubr.msk.bf16.mxu0 %vm361_vm2, %v360_v33  ;;  %v233_v52 = vld [vmem:[%s461_s5] sm:$0xf] }
   0x8   :  { %44 = vperm.xlu0 %336, %v34_v6  }
   0xa   :  { %150 = vperm.xlu1 %337, %v140_v9  }
   0xc   :  { %145 = vperm.xlu0 %336, %v139_v8  }
   0xe   :  { %160 = vperm.xlu1 %337, %v142_v11  }
  0x10   :  { %155 = vperm.xlu0 %336, %v141_v10  }
  0x14   :  { %239 = vperm.xlu0 %336, %v236_v12  }
  0x81   :  { %v50_v14 = vpop.permute.xlu1 %49 }
  0x83   :  { %v40_v15 = vpop.permute.xlu0 %39 }
  0x85   :  { %v55_v19 = vpop.permute.xlu1 %54 }
  0x87   :  { %v45_v22 = vpop.permute.xlu0 %44 }
  0x89   :  { %v151_v35 = vpop.permute.xlu1 %150 }
  0x8b   :  { %v146_v34 = vpop.permute.xlu0 %145 }
  0x8d   :  { %v161_v40 = vpop.permute.xlu1 %160 }
  0x8f   :  { %v156_v36 = vpop.permute.xlu0 %155 }
  0x93   :  { %v240_v53 = vpop.permute.xlu0 %239 }
  0xd9   :  { %v315_v16 = vpop.f32.mrb[0].mxu0 }
  0xda   :  { %v123_v17 = vadd.f32 %v315_v16, %v50_v14  ;;  %v114_v18 = vpop.f32.mrb[1].mxu0 }
  0xdb   :  { %v115_v20 = vadd.f32 %v114_v18, %v40_v15  ;;  %v316_v21 = vpop.f32.mrb[2].mxu0 }
  0xdc   :  { %343 = vtanh.f32 %v123_v17  ;;  %v126_v23 = vadd.f32 %v316_v21, %v55_v19  ;;  %v117_v24 = vpop.f32.mrb[3].mxu0 }
  0xdd   :  { %345 = vtanh.f32 %v115_v20  ;;  %v118_v25 = vadd.f32 %v117_v24, %v45_v22 }
  0xde   :  { %347 = vtanh.f32 %v126_v23 }
  0xdf   :  { %349 = vtanh.f32 %v118_v25 }
  0xe6   :  { %v344_v26 = vpop.eup %343 }
  0xe7   :  { %v346_v27 = vpop.eup %345 }
  0xe8   :  { %v348_v28 = vpop.eup %347 }
  0xe9   :  { %v350_v29 = vpop.eup %349  ;;  %v138_v30 = vpack.c.bf16 %v348_v28, %v344_v26 }
  0xea   :  { %v137_v31 = vpack.c.bf16 %v350_v29, %v346_v27 }
  0xec   :  { %317 = vmatprep.subr.bf16.mxu1 %v137_v31 }
  0xed   :  { %318 = vmatpush3.bf16.msra.mxu1 %v137_v31 }
  0xee   :  { %319 = vmatprep.subr.bf16.mxu1 %v138_v30 }
  0xf1   :  { %320 = vmatpush3.bf16.msra.mxu1 %v138_v30 }
  0xf4   :  { %322 = vmatmul.mubr.msk.bf16.vlgmr.msra.gmra.mrb[0].mxu1 %vm173_vm1, %v342_v32 }
 0x1c7   :  { %v323_v37 = vpop.f32.mrb[0].mxu1 }
 0x1c8   :  { %v223_v38 = vadd.f32 %v323_v37, %v156_v36  ;;  %v214_v39 = vpop.f32.mrb[1].mxu1 }
 0x1c9   :  { %v215_v41 = vadd.f32 %v214_v39, %v146_v34  ;;  %v324_v42 = vpop.f32.mrb[2].mxu1 }
 0x1ca   :  { %351 = vtanh.f32 %v223_v38  ;;  %v226_v43 = vadd.f32 %v324_v42, %v161_v40  ;;  %v217_v44 = vpop.f32.mrb[3].mxu1 }
 0x1cb   :  { %353 = vtanh.f32 %v215_v41  ;;  %v218_v45 = vadd.f32 %v217_v44, %v151_v35 }
 0x1cc   :  { %355 = vtanh.f32 %v226_v43 }
 0x1cd   :  { %357 = vtanh.f32 %v218_v45 }
 0x1d4   :  { %v352_v46 = vpop.eup %351 }
 0x1d5   :  { %v354_v47 = vpop.eup %353 }
 0x1d6   :  { %v356_v48 = vpop.eup %355 }
 0x1d7   :  { %v358_v49 = vpop.eup %357  ;;  %v235_v50 = vpack.c.bf16 %v356_v48, %v352_v46 }
 0x1d8   :  { %v234_v51 = vpack.c.bf16 %v358_v49, %v354_v47 }
 0x1da   :  { %326 = vmatpush3.bf16.msra.mxu0 %v234_v51 }
 0x1db   :  { %327 = vmatprep.subr.bf16.mxu0 %v360_v33 }
 0x1de   :  { %328 = vmatpush3.bf16.msra.mxu0 %v235_v50 }
 0x1e1   :  { %330 = vmatmul.mubr.msk.bf16.vlgmr.msra.gmra.mrb[4].mxu0 %vm173_vm1, %v233_v52 }
 0x2b4   :  { %v279_v54 = vpop.f32.mrb[4].mxu0 }
 0x2b5   :  { %v280_v55 = vadd.f32 %v279_v54, %v240_v53  ;;  %v331_v56 = vpop.f32.mrb[5].mxu0 }
 0x2b6   :  { %v282_v57 = vpop.f32.mrb[6].mxu0 }
 0x2b7   :  { %286 = vst.msk [vmem:[%s462_s7] sm:$0xff] %vm285_vm3, %v280_v55  ;;  %v332_v58 = vpop.f32.mrb[7].mxu0 }

</bundles_post_ra>
